<compile_context>
chip_gen: v6e
topology: v6e:2x2x1
jax: 0.10.0
libtpu: 0.0.40
codegen_flags: <defaults>
</compile_context>

<pallas_src>
import math
import functools

import jax
import jax.numpy as jnp
from jax.experimental import pallas as pl
from jax.experimental.pallas import tpu as pltpu


# ----------------------------------------------------------------------------
# Kernel
# ----------------------------------------------------------------------------
def _lru_cell_kernel(h1_ref, h2_ref,
                     wlin1_ref, wlin2_ref, blin_ref,
                     wg0_ref, bg0_ref,
                     wg1_ref, bg1_ref,
                     *out_refs):
    """One batch tile: 12 small MXU dots + f32 gating, no concats, no slices.

    wlin1/wlin2: (4, H, H)  per-gate column blocks of Linear(2H->4H),
                            split into the h1-half and h2-half of K.
    wg0/wg1:     (2, H, H)  K-split halves of gate0 / gate1.
    blin:        (4, 1, H); bg0/bg1: (1, H)  (f32).
    out_refs:    either ((TM, 2H),) packed, or ((TM, H), (TM, H)).
    """
    cdt = wlin1_ref.dtype                       # MXU input dtype (bf16 or f32)
    h1 = h1_ref[...]                            # (TM, H) f32
    h2 = h2_ref[...]
    h1c = h1.astype(cdt)
    h2c = h2.astype(cdt)

    def gate(k):
        # gate k of sigmoid(Linear_{2H->4H}([h1, h2])), via two accumulating dots.
        pre = (jnp.dot(h1c, wlin1_ref[k], preferred_element_type=jnp.float32)
               + jnp.dot(h2c, wlin2_ref[k], preferred_element_type=jnp.float32)
               + blin_ref[k])
        return jax.nn.sigmoid(pre)              # f32 (EUP)

    # r / q first so the dependent second-stage dots can start early; the
    # gate-independent h1@wg0[0] / h2@wg1[0] dots overlap the EUP sigmoids
    # (LLO schedules across this dataflow).
    r = gate(2)
    q = gate(3)
    z0 = gate(0)
    z1 = gate(1)

    # h0_cap = tanh(gate0([h1, h2*r])) ; h1_cap = tanh(gate1([h2, h1*q]))
    h0_pre = (jnp.dot(h1c, wg0_ref[0], preferred_element_type=jnp.float32)
              + jnp.dot((h2 * r).astype(cdt), wg0_ref[1],
                        preferred_element_type=jnp.float32)
              + bg0_ref[...])
    h1_pre = (jnp.dot(h2c, wg1_ref[0], preferred_element_type=jnp.float32)
              + jnp.dot((h1 * q).astype(cdt), wg1_ref[1],
                        preferred_element_type=jnp.float32)
              + bg1_ref[...])
    h0_cap = jnp.tanh(h0_pre)
    h1_cap = jnp.tanh(h1_pre)

    o0 = z0 * h1_cap + (1.0 - z0) * h1
    o1 = z1 * h0_cap + (1.0 - z1) * h2

    if len(out_refs) == 1:
        # Small-H path: one lane-denser (TM, 2H) store instead of two masked
        # sub-128-lane stores.
        out_refs[0][...] = jnp.concatenate([o0, o1], axis=1)
    else:
        out_refs[0][...] = o0
        out_refs[1][...] = o1


# ----------------------------------------------------------------------------
# Wrapper
# ----------------------------------------------------------------------------
def prepare_params(params, compute_dtype=jnp.float32):
    """One-time parameter repacking into kernel layout (hoist out of forward)."""
    H = params["b_g0"].shape[0]

    wlin_t = params["w_lin"].T                  # (2H, 4H): [h1|h2]-rows, gate-cols
    # (H, 4H) -> (4, H, H): per-gate column blocks for each K-half.
    wlin_h1 = wlin_t[:H].reshape(H, 4, H).transpose(1, 0, 2)
    wlin_h2 = wlin_t[H:].reshape(H, 4, H).transpose(1, 0, 2)

    wg0_t = params["w_g0"].T                    # (2H, H)
    wg1_t = params["w_g1"].T
    wg0 = jnp.stack([wg0_t[:H], wg0_t[H:]])     # (2, H, H): [h1-half, (h2*r)-half]
    wg1 = jnp.stack([wg1_t[:H], wg1_t[H:]])     # (2, H, H): [h2-half, (h1*q)-half]

    return {
        "wlin_h1": wlin_h1.astype(compute_dtype),
        "wlin_h2": wlin_h2.astype(compute_dtype),
        "b_lin":   params["b_lin"].reshape(4, 1, H).astype(jnp.float32),
        "wg0":     wg0.astype(compute_dtype),
        "b_g0":    params["b_g0"].reshape(1, H).astype(jnp.float32),
        "wg1":     wg1.astype(compute_dtype),
        "b_g1":    params["b_g1"].reshape(1, H).astype(jnp.float32),
    }


def _vmem_limit_bytes(tm, H, weight_itemsize):
    """Rough VMEM budget: resident weights + double-buffered activation tiles."""
    weights = 12 * H * H * weight_itemsize + 6 * H * 4         # 8+2+2 HxH blocks
    acts = 2 * tm * H * 4                                       # h1, h2 tiles (f32)
    outs = 2 * tm * H * 4
    est = weights + 2 * (acts + outs) + 8 * tm * H * 4 + (2 << 20)
    # Clamp well under v7x's 64 MiB physical VMEM; larger H needs K-tiling.
    return int(min(max(est, 8 << 20), 48 << 20))


def _resident_spec(arr):
    """Full-array block with a constant index_map: stays VMEM-resident."""
    nd = arr.ndim
    return pl.BlockSpec(arr.shape, lambda i, _nd=nd: (0,) * _nd)


@functools.partial(jax.jit, static_argnames=("block_m",))
def lru_cell(h1, h2, prep, *, block_m=256):
    """LRUCell forward. `prep` comes from prepare_params (hoisted)."""
    if h2 is None:
        h2 = jnp.zeros_like(h1)
    h1 = h1.astype(jnp.float32)
    h2 = h2.astype(jnp.float32)
    B, H = h1.shape

    # Batch tile: whole batch if small, else block_m-row tiles (multiple of 8).
    tm = B if B <= block_m else block_m
    grid = (pl.cdiv(B, tm),)

    act_spec = pl.BlockSpec((tm, H), lambda i: (i, 0))
    in_specs = [act_spec, act_spec,
                _resident_spec(prep["wlin_h1"]), _resident_spec(prep["wlin_h2"]),
                _resident_spec(prep["b_lin"]),
                _resident_spec(prep["wg0"]), _resident_spec(prep["b_g0"]),
                _resident_spec(prep["wg1"]), _resident_spec(prep["b_g1"])]

    pack = H < 128
    if pack:
        out_shape = jax.ShapeDtypeStruct((B, 2 * H), jnp.float32)
        out_specs = pl.BlockSpec((tm, 2 * H), lambda i: (i, 0))
    else:
        out_shape = (jax.ShapeDtypeStruct((B, H), jnp.float32),
                     jax.ShapeDtypeStruct((B, H), jnp.float32))
        out_specs = (act_spec, act_spec)

    out = pl.pallas_call(
        _lru_cell_kernel,
        grid=grid,
        in_specs=in_specs,
        out_specs=out_specs,
        out_shape=out_shape,
        compiler_params=pltpu.CompilerParams(
            dimension_semantics=("parallel",),
            vmem_limit_bytes=_vmem_limit_bytes(
                tm, H, jnp.dtype(prep["wlin_h1"].dtype).itemsize)),
    )(h1, h2,
      prep["wlin_h1"], prep["wlin_h2"], prep["b_lin"],
      prep["wg0"], prep["b_g0"], prep["wg1"], prep["b_g1"])

    if pack:
        return out[:, :H], out[:, H:]
    return out[0], out[1]


# ----------------------------------------------------------------------------
# Init + pure-JAX reference (mirrors the PyTorch module)
# ----------------------------------------------------------------------------
def init_params(key, hidden_size):
    """Deterministic init mirroring LRUCell.reset_parameters: U(-stdv, stdv)."""
    H = hidden_size
    stdv = 1.0 / math.sqrt(H)
    ks = jax.random.split(key, 6)
    u = lambda k, shape: jax.random.uniform(k, shape, minval=-stdv, maxval=stdv,
                                            dtype=jnp.float32)
    return {
        "w_lin": u(ks[0], (4 * H, 2 * H)),   # nn.Linear(2H, 4H).weight
        "b_lin": u(ks[1], (4 * H,)),
        "w_g0":  u(ks[2], (H, 2 * H)),       # nn.Linear(2H, H).weight
        "b_g0":  u(ks[3], (H,)),
        "w_g1":  u(ks[4], (H, 2 * H)),
        "b_g1":  u(ks[5], (H,)),
    }


def lru_cell_reference(h1, h2, params):
    if h2 is None:
        h2 = jnp.zeros_like(h1)
    H = h1.shape[1]
    cat = jnp.concatenate([h1, h2], axis=1)
    g = jax.nn.sigmoid(cat @ params["w_lin"].T + params["b_lin"])
    z0, z1, r, q = g[:, :H], g[:, H:2 * H], g[:, 2 * H:3 * H], g[:, 3 * H:]
    h0_cap = jnp.tanh(jnp.concatenate([h1, h2 * r], axis=1) @ params["w_g0"].T
                      + params["b_g0"])
    h1_cap = jnp.tanh(jnp.concatenate([h2, h1 * q], axis=1) @ params["w_g1"].T
                      + params["b_g1"])
    return (z0 * h1_cap + (1.0 - z0) * h1,
            z1 * h0_cap + (1.0 - z1) * h2)


# ----------------------------------------------------------------------------
# Test
# ----------------------------------------------------------------------------
if __name__ == "__main__":
    key = jax.random.PRNGKey(0)

    # Small toy shape from the spec (packed small-H path) + a moderate shape
    # that exercises the batch grid and the lane-dense split-output path.
    for (B, H) in [(2, 32), (256, 128)]:
        k_param, k_h1, k_h2, key = jax.random.split(key, 4)
        params = init_params(k_param, H)
        h1 = jax.random.normal(k_h1, (B, H), dtype=jnp.float32)
        h2 = jax.random.normal(k_h2, (B, H), dtype=jnp.float32)

        ref0, ref1 = lru_cell_reference(h1, h2, params)

        # f32 compute path: tight tolerance semantics check.
        prep_f32 = prepare_params(params, compute_dtype=jnp.float32)
        out0, out1 = lru_cell(h1, h2, prep_f32, block_m=128)
        jax.block_until_ready((out0, out1))
        assert jnp.allclose(out0, ref0, atol=2e-5, rtol=2e-5)
        assert jnp.allclose(out1, ref1, atol=2e-5, rtol=2e-5)

        if (B, H) == (2, 32):
            # bf16 MXU-input path (default for v6e/v7x): looser tolerance.
            prep_bf16 = prepare_params(params, compute_dtype=jnp.bfloat16)
            out0b, out1b = lru_cell(h1, h2, prep_bf16, block_m=128)
            jax.block_until_ready((out0b, out1b))
            assert jnp.allclose(out0b, ref0, atol=5e-2, rtol=5e-2)
            assert jnp.allclose(out1b, ref1, atol=5e-2, rtol=5e-2)

            # h2=None path (module allows a single-input call).
            n0, n1 = lru_cell(h1, None, prep_f32, block_m=128)
            r0, r1 = lru_cell_reference(h1, None, params)
            jax.block_until_ready((n0, n1))
            assert jnp.allclose(n0, r0, atol=2e-5, rtol=2e-5)
            assert jnp.allclose(n1, r1, atol=2e-5, rtol=2e-5)

    print("KERNEL_OK")
</pallas_src>

<mosaic_0001>
module attributes {stable_mosaic.version = 11 : i64} {
  func.func @_lru_cell_kernel(%arg0: i32, %arg1: memref<2x32xf32, #tpu.memory_space<vmem>>, %arg2: memref<2x32xf32, #tpu.memory_space<vmem>>, %arg3: memref<4x32x32xf32, #tpu.memory_space<vmem>>, %arg4: memref<4x32x32xf32, #tpu.memory_space<vmem>>, %arg5: memref<4x1x32xf32, #tpu.memory_space<vmem>>, %arg6: memref<2x32x32xf32, #tpu.memory_space<vmem>>, %arg7: memref<1x32xf32, #tpu.memory_space<vmem>>, %arg8: memref<2x32x32xf32, #tpu.memory_space<vmem>>, %arg9: memref<1x32xf32, #tpu.memory_space<vmem>>, %arg10: memref<2x64xf32, #tpu.memory_space<vmem>>) attributes {dimension_semantics = [#tpu.dimension_semantics<parallel>], iteration_bounds = array<i64: 1>, scalar_prefetch = 0 : i64, scratch_operands = 0 : i64, tpu.core_type = #tpu.core_type<tc>, window_params = [{transform_indices = @transform_0, window_bounds = array<i64: 2, 32>}, {transform_indices = @transform_1, window_bounds = array<i64: 2, 32>}, {pipeline_mode = #tpu.pipeline_mode<synchronous>, transform_indices = @transform_2, window_bounds = array<i64: 4, 32, 32>}, {pipeline_mode = #tpu.pipeline_mode<synchronous>, transform_indices = @transform_3, window_bounds = array<i64: 4, 32, 32>}, {pipeline_mode = #tpu.pipeline_mode<synchronous>, transform_indices = @transform_4, window_bounds = array<i64: 4, 1, 32>}, {pipeline_mode = #tpu.pipeline_mode<synchronous>, transform_indices = @transform_5, window_bounds = array<i64: 2, 32, 32>}, {pipeline_mode = #tpu.pipeline_mode<synchronous>, transform_indices = @transform_6, window_bounds = array<i64: 1, 32>}, {pipeline_mode = #tpu.pipeline_mode<synchronous>, transform_indices = @transform_7, window_bounds = array<i64: 2, 32, 32>}, {pipeline_mode = #tpu.pipeline_mode<synchronous>, transform_indices = @transform_8, window_bounds = array<i64: 1, 32>}, {transform_indices = @transform_9, window_bounds = array<i64: 2, 64>}]} {
    %c0 = arith.constant 0 : index
    %c0_0 = arith.constant 0 : index
    %0 = vector.load %arg1[%c0, %c0_0] : memref<2x32xf32, #tpu.memory_space<vmem>>, vector<2x32xf32>
    %c0_1 = arith.constant 0 : index
    %c0_2 = arith.constant 0 : index
    %1 = vector.load %arg2[%c0_1, %c0_2] : memref<2x32xf32, #tpu.memory_space<vmem>>, vector<2x32xf32>
    %c2 = arith.constant 2 : index
    %c0_3 = arith.constant 0 : index
    %c0_4 = arith.constant 0 : index
    %2 = vector.load %arg3[%c2, %c0_3, %c0_4] : memref<4x32x32xf32, #tpu.memory_space<vmem>>, vector<1x32x32xf32>
    %3 = vector.shape_cast %2 : vector<1x32x32xf32> to vector<32x32xf32>
    %cst = arith.constant dense<0.000000e+00> : vector<2x32xf32>
    %4 = tpu.matmul %0, %3, %cst {dimension_numbers = #tpu.dot_dimension_numbers<[1], [0], [0], [1], [0, 0, 1, 1], [], []>} : vector<2x32xf32>, vector<32x32xf32>, vector<2x32xf32> -> vector<2x32xf32>
    %c2_5 = arith.constant 2 : index
    %c0_6 = arith.constant 0 : index
    %c0_7 = arith.constant 0 : index
    %5 = vector.load %arg4[%c2_5, %c0_6, %c0_7] : memref<4x32x32xf32, #tpu.memory_space<vmem>>, vector<1x32x32xf32>
    %6 = vector.shape_cast %5 : vector<1x32x32xf32> to vector<32x32xf32>
    %cst_8 = arith.constant dense<0.000000e+00> : vector<2x32xf32>
    %7 = tpu.matmul %1, %6, %cst_8 {dimension_numbers = #tpu.dot_dimension_numbers<[1], [0], [0], [1], [0, 0, 1, 1], [], []>} : vector<2x32xf32>, vector<32x32xf32>, vector<2x32xf32> -> vector<2x32xf32>
    %8 = arith.addf %4, %7 : vector<2x32xf32>
    %c2_9 = arith.constant 2 : index
    %c0_10 = arith.constant 0 : index
    %c0_11 = arith.constant 0 : index
    %9 = vector.load %arg5[%c2_9, %c0_10, %c0_11] : memref<4x1x32xf32, #tpu.memory_space<vmem>>, vector<1x1x32xf32>
    %10 = vector.shape_cast %9 : vector<1x1x32xf32> to vector<1x32xf32>
    %11 = vector.broadcast %10 : vector<1x32xf32> to vector<2x32xf32>
    %12 = arith.addf %8, %11 : vector<2x32xf32>
    %13 = arith.negf %12 : vector<2x32xf32>
    %14 = math.exp %13 : vector<2x32xf32>
    %cst_12 = arith.constant 1.000000e+00 : f32
    %15 = vector.broadcast %cst_12 : f32 to vector<2x32xf32>
    %16 = arith.addf %15, %14 : vector<2x32xf32>
    %17 = arith.divf %15, %16 : vector<2x32xf32>
    %c3 = arith.constant 3 : index
    %c0_13 = arith.constant 0 : index
    %c0_14 = arith.constant 0 : index
    %18 = vector.load %arg3[%c3, %c0_13, %c0_14] : memref<4x32x32xf32, #tpu.memory_space<vmem>>, vector<1x32x32xf32>
    %19 = vector.shape_cast %18 : vector<1x32x32xf32> to vector<32x32xf32>
    %cst_15 = arith.constant dense<0.000000e+00> : vector<2x32xf32>
    %20 = tpu.matmul %0, %19, %cst_15 {dimension_numbers = #tpu.dot_dimension_numbers<[1], [0], [0], [1], [0, 0, 1, 1], [], []>} : vector<2x32xf32>, vector<32x32xf32>, vector<2x32xf32> -> vector<2x32xf32>
    %c3_16 = arith.constant 3 : index
    %c0_17 = arith.constant 0 : index
    %c0_18 = arith.constant 0 : index
    %21 = vector.load %arg4[%c3_16, %c0_17, %c0_18] : memref<4x32x32xf32, #tpu.memory_space<vmem>>, vector<1x32x32xf32>
    %22 = vector.shape_cast %21 : vector<1x32x32xf32> to vector<32x32xf32>
    %cst_19 = arith.constant dense<0.000000e+00> : vector<2x32xf32>
    %23 = tpu.matmul %1, %22, %cst_19 {dimension_numbers = #tpu.dot_dimension_numbers<[1], [0], [0], [1], [0, 0, 1, 1], [], []>} : vector<2x32xf32>, vector<32x32xf32>, vector<2x32xf32> -> vector<2x32xf32>
    %24 = arith.addf %20, %23 : vector<2x32xf32>
    %c3_20 = arith.constant 3 : index
    %c0_21 = arith.constant 0 : index
    %c0_22 = arith.constant 0 : index
    %25 = vector.load %arg5[%c3_20, %c0_21, %c0_22] : memref<4x1x32xf32, #tpu.memory_space<vmem>>, vector<1x1x32xf32>
    %26 = vector.shape_cast %25 : vector<1x1x32xf32> to vector<1x32xf32>
    %27 = vector.broadcast %26 : vector<1x32xf32> to vector<2x32xf32>
    %28 = arith.addf %24, %27 : vector<2x32xf32>
    %29 = arith.negf %28 : vector<2x32xf32>
    %30 = math.exp %29 : vector<2x32xf32>
    %cst_23 = arith.constant 1.000000e+00 : f32
    %31 = vector.broadcast %cst_23 : f32 to vector<2x32xf32>
    %32 = arith.addf %31, %30 : vector<2x32xf32>
    %33 = arith.divf %31, %32 : vector<2x32xf32>
    %c0_24 = arith.constant 0 : index
    %c0_25 = arith.constant 0 : index
    %c0_26 = arith.constant 0 : index
    %34 = vector.load %arg3[%c0_24, %c0_25, %c0_26] : memref<4x32x32xf32, #tpu.memory_space<vmem>>, vector<1x32x32xf32>
    %35 = vector.shape_cast %34 : vector<1x32x32xf32> to vector<32x32xf32>
    %cst_27 = arith.constant dense<0.000000e+00> : vector<2x32xf32>
    %36 = tpu.matmul %0, %35, %cst_27 {dimension_numbers = #tpu.dot_dimension_numbers<[1], [0], [0], [1], [0, 0, 1, 1], [], []>} : vector<2x32xf32>, vector<32x32xf32>, vector<2x32xf32> -> vector<2x32xf32>
    %c0_28 = arith.constant 0 : index
    %c0_29 = arith.constant 0 : index
    %c0_30 = arith.constant 0 : index
    %37 = vector.load %arg4[%c0_28, %c0_29, %c0_30] : memref<4x32x32xf32, #tpu.memory_space<vmem>>, vector<1x32x32xf32>
    %38 = vector.shape_cast %37 : vector<1x32x32xf32> to vector<32x32xf32>
    %cst_31 = arith.constant dense<0.000000e+00> : vector<2x32xf32>
    %39 = tpu.matmul %1, %38, %cst_31 {dimension_numbers = #tpu.dot_dimension_numbers<[1], [0], [0], [1], [0, 0, 1, 1], [], []>} : vector<2x32xf32>, vector<32x32xf32>, vector<2x32xf32> -> vector<2x32xf32>
    %40 = arith.addf %36, %39 : vector<2x32xf32>
    %c0_32 = arith.constant 0 : index
    %c0_33 = arith.constant 0 : index
    %c0_34 = arith.constant 0 : index
    %41 = vector.load %arg5[%c0_32, %c0_33, %c0_34] : memref<4x1x32xf32, #tpu.memory_space<vmem>>, vector<1x1x32xf32>
    %42 = vector.shape_cast %41 : vector<1x1x32xf32> to vector<1x32xf32>
    %43 = vector.broadcast %42 : vector<1x32xf32> to vector<2x32xf32>
    %44 = arith.addf %40, %43 : vector<2x32xf32>
    %45 = arith.negf %44 : vector<2x32xf32>
    %46 = math.exp %45 : vector<2x32xf32>
    %cst_35 = arith.constant 1.000000e+00 : f32
    %47 = vector.broadcast %cst_35 : f32 to vector<2x32xf32>
    %48 = arith.addf %47, %46 : vector<2x32xf32>
    %49 = arith.divf %47, %48 : vector<2x32xf32>
    %c1 = arith.constant 1 : index
    %c0_36 = arith.constant 0 : index
    %c0_37 = arith.constant 0 : index
    %50 = vector.load %arg3[%c1, %c0_36, %c0_37] : memref<4x32x32xf32, #tpu.memory_space<vmem>>, vector<1x32x32xf32>
    %51 = vector.shape_cast %50 : vector<1x32x32xf32> to vector<32x32xf32>
    %cst_38 = arith.constant dense<0.000000e+00> : vector<2x32xf32>
    %52 = tpu.matmul %0, %51, %cst_38 {dimension_numbers = #tpu.dot_dimension_numbers<[1], [0], [0], [1], [0, 0, 1, 1], [], []>} : vector<2x32xf32>, vector<32x32xf32>, vector<2x32xf32> -> vector<2x32xf32>
    %c1_39 = arith.constant 1 : index
    %c0_40 = arith.constant 0 : index
    %c0_41 = arith.constant 0 : index
    %53 = vector.load %arg4[%c1_39, %c0_40, %c0_41] : memref<4x32x32xf32, #tpu.memory_space<vmem>>, vector<1x32x32xf32>
    %54 = vector.shape_cast %53 : vector<1x32x32xf32> to vector<32x32xf32>
    %cst_42 = arith.constant dense<0.000000e+00> : vector<2x32xf32>
    %55 = tpu.matmul %1, %54, %cst_42 {dimension_numbers = #tpu.dot_dimension_numbers<[1], [0], [0], [1], [0, 0, 1, 1], [], []>} : vector<2x32xf32>, vector<32x32xf32>, vector<2x32xf32> -> vector<2x32xf32>
    %56 = arith.addf %52, %55 : vector<2x32xf32>
    %c1_43 = arith.constant 1 : index
    %c0_44 = arith.constant 0 : index
    %c0_45 = arith.constant 0 : index
    %57 = vector.load %arg5[%c1_43, %c0_44, %c0_45] : memref<4x1x32xf32, #tpu.memory_space<vmem>>, vector<1x1x32xf32>
    %58 = vector.shape_cast %57 : vector<1x1x32xf32> to vector<1x32xf32>
    %59 = vector.broadcast %58 : vector<1x32xf32> to vector<2x32xf32>
    %60 = arith.addf %56, %59 : vector<2x32xf32>
    %61 = arith.negf %60 : vector<2x32xf32>
    %62 = math.exp %61 : vector<2x32xf32>
    %cst_46 = arith.constant 1.000000e+00 : f32
    %63 = vector.broadcast %cst_46 : f32 to vector<2x32xf32>
    %64 = arith.addf %63, %62 : vector<2x32xf32>
    %65 = arith.divf %63, %64 : vector<2x32xf32>
    %c0_47 = arith.constant 0 : index
    %c0_48 = arith.constant 0 : index
    %c0_49 = arith.constant 0 : index
    %66 = vector.load %arg6[%c0_47, %c0_48, %c0_49] : memref<2x32x32xf32, #tpu.memory_space<vmem>>, vector<1x32x32xf32>
    %67 = vector.shape_cast %66 : vector<1x32x32xf32> to vector<32x32xf32>
    %cst_50 = arith.constant dense<0.000000e+00> : vector<2x32xf32>
    %68 = tpu.matmul %0, %67, %cst_50 {dimension_numbers = #tpu.dot_dimension_numbers<[1], [0], [0], [1], [0, 0, 1, 1], [], []>} : vector<2x32xf32>, vector<32x32xf32>, vector<2x32xf32> -> vector<2x32xf32>
    %69 = arith.mulf %1, %17 : vector<2x32xf32>
    %c1_51 = arith.constant 1 : index
    %c0_52 = arith.constant 0 : index
    %c0_53 = arith.constant 0 : index
    %70 = vector.load %arg6[%c1_51, %c0_52, %c0_53] : memref<2x32x32xf32, #tpu.memory_space<vmem>>, vector<1x32x32xf32>
    %71 = vector.shape_cast %70 : vector<1x32x32xf32> to vector<32x32xf32>
    %cst_54 = arith.constant dense<0.000000e+00> : vector<2x32xf32>
    %72 = tpu.matmul %69, %71, %cst_54 {dimension_numbers = #tpu.dot_dimension_numbers<[1], [0], [0], [1], [0, 0, 1, 1], [], []>} : vector<2x32xf32>, vector<32x32xf32>, vector<2x32xf32> -> vector<2x32xf32>
    %73 = arith.addf %68, %72 : vector<2x32xf32>
    %c0_55 = arith.constant 0 : index
    %c0_56 = arith.constant 0 : index
    %74 = vector.load %arg7[%c0_55, %c0_56] : memref<1x32xf32, #tpu.memory_space<vmem>>, vector<1x32xf32>
    %75 = vector.broadcast %74 : vector<1x32xf32> to vector<2x32xf32>
    %76 = arith.addf %73, %75 : vector<2x32xf32>
    %c0_57 = arith.constant 0 : index
    %c0_58 = arith.constant 0 : index
    %c0_59 = arith.constant 0 : index
    %77 = vector.load %arg8[%c0_57, %c0_58, %c0_59] : memref<2x32x32xf32, #tpu.memory_space<vmem>>, vector<1x32x32xf32>
    %78 = vector.shape_cast %77 : vector<1x32x32xf32> to vector<32x32xf32>
    %cst_60 = arith.constant dense<0.000000e+00> : vector<2x32xf32>
    %79 = tpu.matmul %1, %78, %cst_60 {dimension_numbers = #tpu.dot_dimension_numbers<[1], [0], [0], [1], [0, 0, 1, 1], [], []>} : vector<2x32xf32>, vector<32x32xf32>, vector<2x32xf32> -> vector<2x32xf32>
    %80 = arith.mulf %0, %33 : vector<2x32xf32>
    %c1_61 = arith.constant 1 : index
    %c0_62 = arith.constant 0 : index
    %c0_63 = arith.constant 0 : index
    %81 = vector.load %arg8[%c1_61, %c0_62, %c0_63] : memref<2x32x32xf32, #tpu.memory_space<vmem>>, vector<1x32x32xf32>
    %82 = vector.shape_cast %81 : vector<1x32x32xf32> to vector<32x32xf32>
    %cst_64 = arith.constant dense<0.000000e+00> : vector<2x32xf32>
    %83 = tpu.matmul %80, %82, %cst_64 {dimension_numbers = #tpu.dot_dimension_numbers<[1], [0], [0], [1], [0, 0, 1, 1], [], []>} : vector<2x32xf32>, vector<32x32xf32>, vector<2x32xf32> -> vector<2x32xf32>
    %84 = arith.addf %79, %83 : vector<2x32xf32>
    %c0_65 = arith.constant 0 : index
    %c0_66 = arith.constant 0 : index
    %85 = vector.load %arg9[%c0_65, %c0_66] : memref<1x32xf32, #tpu.memory_space<vmem>>, vector<1x32xf32>
    %86 = vector.broadcast %85 : vector<1x32xf32> to vector<2x32xf32>
    %87 = arith.addf %84, %86 : vector<2x32xf32>
    %88 = math.tanh %76 : vector<2x32xf32>
    %89 = math.tanh %87 : vector<2x32xf32>
    %90 = arith.mulf %49, %89 : vector<2x32xf32>
    %cst_67 = arith.constant 1.000000e+00 : f32
    %91 = vector.broadcast %cst_67 : f32 to vector<2x32xf32>
    %92 = arith.subf %91, %49 : vector<2x32xf32>
    %93 = arith.mulf %92, %0 : vector<2x32xf32>
    %94 = arith.addf %90, %93 : vector<2x32xf32>
    %95 = arith.mulf %65, %88 : vector<2x32xf32>
    %cst_68 = arith.constant 1.000000e+00 : f32
    %96 = vector.broadcast %cst_68 : f32 to vector<2x32xf32>
    %97 = arith.subf %96, %65 : vector<2x32xf32>
    %98 = arith.mulf %97, %1 : vector<2x32xf32>
    %99 = arith.addf %95, %98 : vector<2x32xf32>
    %100 = tpu.concatenate %94, %99 in 1 : vector<2x32xf32>, vector<2x32xf32> -> vector<2x64xf32>
    %c0_69 = arith.constant 0 : index
    %c0_70 = arith.constant 0 : index
    %101 = vector.load %arg10[%c0_69, %c0_70] : memref<2x64xf32, #tpu.memory_space<vmem>>, vector<2x64xf32>
    tpu.vector_store %arg10[%c0_69, %c0_70], %100 {strides = array<i32>} : memref<2x64xf32, #tpu.memory_space<vmem>>, vector<2x64xf32>,
    return
  }
  func.func @transform_0(%arg0: i32) -> (i32, i32) {
    %c0_i32 = arith.constant 0 : i32
    %c0_i32_0 = arith.constant 0 : i32
    return %arg0, %c0_i32 : i32, i32
  }
  func.func @transform_1(%arg0: i32) -> (i32, i32) {
    %c0_i32 = arith.constant 0 : i32
    %c0_i32_0 = arith.constant 0 : i32
    return %arg0, %c0_i32 : i32, i32
  }
  func.func @transform_2(%arg0: i32) -> (i32, i32, i32) {
    %c0_i32 = arith.constant 0 : i32
    %c0_i32_0 = arith.constant 0 : i32
    %c0_i32_1 = arith.constant 0 : i32
    %c0_i32_2 = arith.constant 0 : i32
    return %c0_i32, %c0_i32_0, %c0_i32_1 : i32, i32, i32
  }
  func.func @transform_3(%arg0: i32) -> (i32, i32, i32) {
    %c0_i32 = arith.constant 0 : i32
    %c0_i32_0 = arith.constant 0 : i32
    %c0_i32_1 = arith.constant 0 : i32
    %c0_i32_2 = arith.constant 0 : i32
    return %c0_i32, %c0_i32_0, %c0_i32_1 : i32, i32, i32
  }
  func.func @transform_4(%arg0: i32) -> (i32, i32, i32) {
    %c0_i32 = arith.constant 0 : i32
    %c0_i32_0 = arith.constant 0 : i32
    %c0_i32_1 = arith.constant 0 : i32
    %c0_i32_2 = arith.constant 0 : i32
    return %c0_i32, %c0_i32_0, %c0_i32_1 : i32, i32, i32
  }
  func.func @transform_5(%arg0: i32) -> (i32, i32, i32) {
    %c0_i32 = arith.constant 0 : i32
    %c0_i32_0 = arith.constant 0 : i32
    %c0_i32_1 = arith.constant 0 : i32
    %c0_i32_2 = arith.constant 0 : i32
    return %c0_i32, %c0_i32_0, %c0_i32_1 : i32, i32, i32
  }
  func.func @transform_6(%arg0: i32) -> (i32, i32) {
    %c0_i32 = arith.constant 0 : i32
    %c0_i32_0 = arith.constant 0 : i32
    %c0_i32_1 = arith.constant 0 : i32
    return %c0_i32, %c0_i32_0 : i32, i32
  }
  func.func @transform_7(%arg0: i32) -> (i32, i32, i32) {
    %c0_i32 = arith.constant 0 : i32
    %c0_i32_0 = arith.constant 0 : i32
    %c0_i32_1 = arith.constant 0 : i32
    %c0_i32_2 = arith.constant 0 : i32
    return %c0_i32, %c0_i32_0, %c0_i32_1 : i32, i32, i32
  }
  func.func @transform_8(%arg0: i32) -> (i32, i32) {
    %c0_i32 = arith.constant 0 : i32
    %c0_i32_0 = arith.constant 0 : i32
    %c0_i32_1 = arith.constant 0 : i32
    return %c0_i32, %c0_i32_0 : i32, i32
  }
  func.func @transform_9(%arg0: i32) -> (i32, i32) {
    %c0_i32 = arith.constant 0 : i32
    %c0_i32_0 = arith.constant 0 : i32
    return %arg0, %c0_i32 : i32, i32
  }
}

</mosaic_0001>

<bundles_post_ra>
// kernel: lru_cell.1
= control target key start
LH: loop header
LB: loop body
LE: loop exit
PB: predicated region body
PF: predicated region fallthrough
CT: control target
= control target key end

     0   :  { %14 = vsyncpa [#allocation3], 0  ;;  %s1714_s0 = inlined_call_operand.hbm [shape: f32[2,32], index: 0, kind: input, shape index: {}]   ;;  %s1715_s1 = inlined_call_operand.hbm [shape: f32[2,32], index: 1, kind: input, shape index: {}]   ;;  %s1716_s2 = inlined_call_operand.hbm [shape: f32[4,32,32], index: 2, kind: input, shape index: {}]   ;;  %s1717_s3 = inlined_call_operand.hbm [shape: f32[4,32,32], index: 3, kind: input, shape index: {}]   ;;  %s1718_s4 = inlined_call_operand.vmem [shape: f32[4,1,32], index: 4, kind: input, shape index: {}]   ;;  %s1719_s5 = inlined_call_operand.hbm [shape: f32[2,32,32], index: 5, kind: input, shape index: {}]   ;;  %s1720_s6 = inlined_call_operand.vmem [shape: f32[1,32], index: 6, kind: input, shape index: {}]   ;;  %s1721_s7 = inlined_call_operand.hbm [shape: f32[2,32,32], index: 7, kind: input, shape index: {}]   ;;  %s1722_s8 = inlined_call_operand.vmem [shape: f32[1,32], index: 8, kind: input, shape index: {}]   ;;  %s1723_s9 = inlined_call_operand.vmem [shape: f32[2,64], index: 9, kind: output, shape index: {}]  }
   0x1   :  { %15 = vsyncpa [#allocation5], 0 }
   0x2   :  { %16 = vsyncpa [#allocation8], 0 }
   0x3   :  { %17 = vsyncpa [#allocation11], 0  ;;  %s1499_s30 = smov [#allocation4]  }
   0x4   :  { %s34_s10 = sshll.u32 %s1499_s30, 4  ;;  %s35_s10 = int_to_ptr.vmem [resolvable:$true] %s34_s10 }
   0x5   :  { %s1379_s11 = scalar_lea.vmem %s35_s10, 32  ;;  %p1384_p1 = scmp.lt.s32.totalorder %s35_s10, %s35_s10 }
   0x6   :  { %p1380_p0 = scmp.ne.s32.totalorder %s35_s10, %s1379_s11  ;;  %p1385_p2 = scmp.lt.s32.totalorder %s1379_s11, %s1379_s11 }
   0x8   :  { %p1386_p3 = por %p1385_p2, %p1384_p1 }
   0xa   :  { %p1387_p4 = pnand %p1386_p3, %p1380_p0 }
   0xc   :  { %1390 = shalt.err (!%p1387_p4)
}
   0xd   :  { %37 = dma.hbm_to_vmem [thread:$0]  %s1715_s1, 32, %s35_s10, [#allocation5]  }
   0xe   :  { %s1500_s14 = smov [#allocation7]   ;;  %s1501_s16 = smov [#allocation2]  }
   0xf   :  { %s55_s15 = sshll.u32 %s1500_s14, 4  ;;  %s24_s17 = sshll.u32 %s1501_s16, 4  ;;  %s56_s15 = int_to_ptr.vmem [resolvable:$true] %s55_s15  ;;  %s25_s17 = int_to_ptr.vmem [resolvable:$true] %s24_s17 }
  0x10   :  { %s1399_s18 = scalar_lea.vmem %s56_s15, 2048  ;;  %p1404_p6 = scmp.lt.s32.totalorder %s56_s15, %s56_s15 }
  0x11   :  { %p1400_p5 = scmp.ne.s32.totalorder %s56_s15, %s1399_s18  ;;  %p1405_p7 = scmp.lt.s32.totalorder %s1399_s18, %s1399_s18 }
  0x13   :  { %p1406_p8 = por %p1405_p7, %p1404_p6 }
  0x15   :  { %p1407_p9 = pnand %p1406_p8, %p1400_p5 }
  0x17   :  { %1410 = shalt.err (!%p1407_p9)
}
  0x18   :  { %s1502_s19 = smov 128   ;;  %s1503_s20 = smov 8  }
  0x19   :  { %61 = dma.hbm_to_vmem [thread:$0]  %s1717_s3, 2048, %s56_s15, [#allocation8], %s1502_s19, %s1502_s19, %s1503_s20  }
  0x1a   :  { %s1419_s1 = scalar_lea.vmem %s25_s17, 32  ;;  %p1424_p11 = scmp.lt.s32.totalorder %s25_s17, %s25_s17 }
  0x1b   :  { %p1420_p10 = scmp.ne.s32.totalorder %s25_s17, %s1419_s1  ;;  %p1425_p12 = scmp.lt.s32.totalorder %s1419_s1, %s1419_s1 }
  0x1d   :  { %p1426_p13 = por %p1425_p12, %p1424_p11 }
  0x1f   :  { %p1427_p0 = pnand %p1426_p13, %p1420_p10 }
  0x21   :  { %1430 = shalt.err (!%p1427_p0)
}
  0x22   :  { %27 = dma.hbm_to_vmem [thread:$0]  %s1714_s0, 32, %s25_s17, [#allocation3]  }
  0x23   :  { %s1504_s25 = smov [#allocation6]   ;;  %s1505_s27 = smov [#allocation9]  }
  0x24   :  { %s43_s26 = sshll.u32 %s1504_s25, 4  ;;  %s69_s28 = sshll.u32 %s1505_s27, 4  ;;  %s44_s26 = int_to_ptr.vmem [resolvable:$true] %s43_s26  ;;  %s70_s28 = int_to_ptr.vmem [resolvable:$true] %s69_s28 }
  0x25   :  { %s1439_s29 = scalar_lea.vmem %s44_s26, 2048  ;;  %p1444_p2 = scmp.lt.s32.totalorder %s44_s26, %s44_s26 }
  0x26   :  { %p1440_p1 = scmp.ne.s32.totalorder %s44_s26, %s1439_s29  ;;  %p1445_p3 = scmp.lt.s32.totalorder %s1439_s29, %s1439_s29 }
  0x28   :  { %p1446_p4 = por %p1445_p3, %p1444_p2 }
  0x2a   :  { %p1447_p5 = pnand %p1446_p4, %p1440_p1 }
  0x2c   :  { %1450 = shalt.err (!%p1447_p5)
}
  0x2d   :  { %49 = dma.hbm_to_vmem [thread:$0]  %s1716_s2, 2048, %s44_s26, [#allocation5], %s1502_s19, %s1502_s19, %s1503_s20  }
  0x2e   :  { %s1459_s0 = scalar_lea.vmem %s70_s28, 1024  ;;  %p1464_p7 = scmp.lt.s32.totalorder %s70_s28, %s70_s28 }
  0x2f   :  { %p1460_p6 = scmp.ne.s32.totalorder %s70_s28, %s1459_s0  ;;  %p1465_p8 = scmp.lt.s32.totalorder %s1459_s0, %s1459_s0 }
  0x31   :  { %p1466_p9 = por %p1465_p8, %p1464_p7 }
  0x33   :  { %p1467_p10 = pnand %p1466_p9, %p1460_p6 }
  0x35   :  { %1470 = shalt.err (!%p1467_p10)
}
  0x36   :  { %75 = dma.hbm_to_vmem [thread:$0]  %s1719_s5, 1024, %s70_s28, [#allocation8], %s1502_s19, %s1502_s19, %s1503_s20  }
  0x37   :  { %s1506_s12 = smov [#allocation10]  }
  0x38   :  { %s83_s13 = sshll.u32 %s1506_s12, 4  ;;  %s84_s13 = int_to_ptr.vmem [resolvable:$true] %s83_s13 }
  0x39   :  { %s1479_s14 = scalar_lea.vmem %s84_s13, 1024  ;;  %p1484_p12 = scmp.lt.s32.totalorder %s84_s13, %s84_s13 }
  0x3a   :  { %p1480_p11 = scmp.ne.s32.totalorder %s84_s13, %s1479_s14  ;;  %p1485_p13 = scmp.lt.s32.totalorder %s1479_s14, %s1479_s14 }
  0x3c   :  { %p1486_p0 = por %p1485_p13, %p1484_p12 }
  0x3e   :  { %p1487_p1 = pnand %p1486_p0, %p1480_p11 }
  0x40   :  { %1490 = shalt.err (!%p1487_p1)
}
  0x41   :  { %89 = dma.hbm_to_vmem [thread:$0]  %s1721_s7, 1024, %s84_s13, [#allocation11], %s1502_s19, %s1502_s19, %s1503_s20  }
  0x42   :  { %1491 = dma.done.wait [#allocation3], 32  }
  0x43   :  { %1492 = vsyncadd [#allocation3], 4294967264 }
  0x44   :  { %1493 = dma.done.wait [#allocation5], 2080  }
  0x45   :  { %1494 = vsyncadd [#allocation5], 4294965216 }
  0x46   :  { %1495 = dma.done.wait [#allocation8], 3072  }
  0x47   :  { %1496 = vsyncadd [#allocation8], 4294964224 }
  0x48   :  { %1497 = dma.done.wait [#allocation11], 1024  }
  0x49   :  { %1498 = vsyncadd [#allocation11], 4294966272  ;;  %v1507_v0 = vmov 0.0   ;;  %vm1508_vm0 = vmmov 0   ;;  %v121_v1 = vld [vmem:[#allocation7 + $0x58] sm:$0xff]  ;;  %v120_v3 = vld [vmem:[#allocation7 + $0x50] sm:$0xff] }
  0x4a   :  { %1208 = vmatprep.subr.mxu0 %v1507_v0  ;;  %1219 = vmatprep.subr.mxu1 %v1507_v0  ;;  %v116_v2 = vld [vmem:[#allocation6 + $0x58] sm:$0xff]  ;;  %v115_v4 = vld [vmem:[#allocation6 + $0x50] sm:$0xff]  ;;  %v119_v5 = vld [vmem:[#allocation7 + $0x48] sm:$0xff]  ;;  %vm122_vm1 = vcmask 261120   ;;  %vm1113_vm2 = vcmask 517120  }
  0x4b   :  { %1216 = vmatprep.mubr.msk.f32.mxu0 %vm1508_vm0, %v1507_v0  ;;  %1227 = vmatprep.mubr.msk.f32.mxu1 %vm1508_vm0, %v1507_v0  ;;  %v114_v6 = vld [vmem:[#allocation6 + $0x48] sm:$0xff]  ;;  %v118_v7 = vld [vmem:[#allocation7 + $0x40] sm:$0xff]  ;;  %v1600_v9 = vld [vmem:[#allocation4] sm:$0x3] }
  0x4c   :  { %1209 = vmatpush3.msra.mxu0 %v121_v1  ;;  %1220 = vmatpush3.msra.mxu1 %v116_v2  ;;  %v113_v8 = vld [vmem:[#allocation6 + $0x40] sm:$0xff]  ;;  %v1602_v10 = vld [vmem:[#allocation2] sm:$0x3]  ;;  %v292_v13 = vld [vmem:[#allocation7 + $0x70] sm:$0xff] }
  0x4d   :  { %1210 = vmatprep.subr.mxu0 %v1507_v0  ;;  %1221 = vmatprep.subr.mxu1 %v1507_v0  ;;  %v293_v11 = vld [vmem:[#allocation7 + $0x78] sm:$0xff]  ;;  %v287_v14 = vld [vmem:[#allocation6 + $0x70] sm:$0xff]  ;;  %v291_v15 = vld [vmem:[#allocation7 + $0x68] sm:$0xff] }
  0x4e   :  { %1211 = vmatpush3.msra.mxu0 %v120_v3  ;;  %1222 = vmatpush3.msra.mxu1 %v115_v4  ;;  %v288_v12 = vld [vmem:[#allocation6 + $0x78] sm:$0xff]  ;;  %v286_v16 = vld [vmem:[#allocation6 + $0x68] sm:$0xff]  ;;  %v290_v17 = vld [vmem:[#allocation7 + $0x60] sm:$0xff] }
  0x4f   :  { %1212 = vmatprep.subr.mxu0 %v1507_v0  ;;  %1223 = vmatprep.subr.mxu1 %v1507_v0  ;;  %v285_v18 = vld [vmem:[#allocation6 + $0x60] sm:$0xff]  ;;  %v456_v19 = vld [vmem:[#allocation7 + $0x18] sm:$0xff]  ;;  %v455_v21 = vld [vmem:[#allocation7 + $0x10] sm:$0xff] }
  0x50   :  { %1213 = vmatpush3.msra.mxu0 %v119_v5  ;;  %1224 = vmatpush3.msra.mxu1 %v114_v6  ;;  %v452_v20 = vld [vmem:[#allocation6 + $0x18] sm:$0xff]  ;;  %v451_v22 = vld [vmem:[#allocation6 + $0x10] sm:$0xff]  ;;  %v454_v23 = vld [vmem:[#allocation7 + $0x8] sm:$0xff] }
  0x51   :  { %1214 = vmatprep.subr.mxu0 %v1507_v0  ;;  %1225 = vmatprep.subr.mxu1 %v1507_v0  ;;  %v450_v24 = vld [vmem:[#allocation6 + $0x8] sm:$0xff]  ;;  %v453_v25 = vld [vmem:[#allocation7] sm:$0xff]  ;;  %v620_v27 = vld [vmem:[#allocation7 + $0x38] sm:$0xff] }
  0x52   :  { %1215 = vmatpush3.msra.mxu0 %v118_v7  ;;  %1226 = vmatpush3.msra.mxu1 %v113_v8  ;;  %v449_v26 = vld [vmem:[#allocation6] sm:$0xff]  ;;  %v615_v28 = vld [vmem:[#allocation6 + $0x38] sm:$0xff]  ;;  %v619_v29 = vld [vmem:[#allocation7 + $0x30] sm:$0xff] }
  0x53   :  { %1217 = vmatmul.mubr.msk.f32.vlgmr.msra.gmra.mxu0 %vm122_vm1, %v1600_v9  ;;  %1228 = vmatmul.mubr.msk.f32.vlgmr.msra.gmra.mxu1 %vm122_vm1, %v1602_v10  ;;  %v614_v30 = vld [vmem:[#allocation6 + $0x30] sm:$0xff]  ;;  %v618_v31 = vld [vmem:[#allocation7 + $0x28] sm:$0xff]  ;;  %v617_v33 = vld [vmem:[#allocation7 + $0x20] sm:$0xff] }
  0x54   :  { %1230 = vmatprep.subr.mxu0 %v1507_v0  ;;  %1241 = vmatprep.subr.mxu1 %v1507_v0  ;;  %v613_v32 = vld [vmem:[#allocation6 + $0x28] sm:$0xff]  ;;  %v612_v34 = vld [vmem:[#allocation6 + $0x20] sm:$0xff]  ;;  %v779_v35 = vld [vmem:[#allocation9 + $0x18] sm:$0xff] }
  0x55   :  { %1231 = vmatpush3.msra.mxu0 %v293_v11  ;;  %1242 = vmatpush3.msra.mxu1 %v288_v12  ;;  %v785_v36 = vld [vmem:[#allocation9 + $0x38] sm:$0xff]  ;;  %v778_v37 = vld [vmem:[#allocation9 + $0x10] sm:$0xff]  ;;  %v777_v39 = vld [vmem:[#allocation9 + $0x8] sm:$0xff] }
  0x56   :  { %1232 = vmatprep.subr.mxu0 %v1507_v0  ;;  %1243 = vmatprep.subr.mxu1 %v1507_v0  ;;  %v784_v38 = vld [vmem:[#allocation9 + $0x30] sm:$0xff]  ;;  %v783_v40 = vld [vmem:[#allocation9 + $0x28] sm:$0xff]  ;;  %v776_v41 = vld [vmem:[#allocation9] sm:$0xff] }
  0x57   :  { %1233 = vmatpush3.msra.mxu0 %v292_v13  ;;  %1244 = vmatpush3.msra.mxu1 %v287_v14  ;;  %v782_v42 = vld [vmem:[#allocation9 + $0x20] sm:$0xff]  ;;  %v940_v43 = vld [vmem:[#allocation10 + $0x18] sm:$0xff]  ;;  %v939_v44 = vld [vmem:[#allocation10 + $0x10] sm:$0xff] }
  0x58   :  { %1234 = vmatprep.subr.mxu0 %v1507_v0  ;;  %1245 = vmatprep.subr.mxu1 %v1507_v0  ;;  %v938_v45 = vld [vmem:[#allocation10 + $0x8] sm:$0xff]  ;;  %v937_v46 = vld [vmem:[#allocation10] sm:$0xff]  ;;  %v1126_v49 = vld [vmem:[%s1718_s4 + $0x2] ss:$0 sm:$0xff] }
  0x59   :  { %1235 = vmatpush3.msra.mxu0 %v291_v15  ;;  %1246 = vmatpush3.msra.mxu1 %v286_v16  ;;  %v1131_v57 = vld [vmem:[%s1718_s4 + $0x3] ss:$0 sm:$0xff]  ;;  %v945_v7 = vld [vmem:[#allocation10 + $0x30] sm:$0xff]  ;;  %v944_v8 = vld [vmem:[#allocation10 + $0x28] sm:$0xff] }
  0x5a   :  { %1236 = vmatprep.subr.mxu0 %v1507_v0  ;;  %1247 = vmatprep.subr.mxu1 %v1507_v0  ;;  %v946_v6 = vld [vmem:[#allocation10 + $0x38] sm:$0xff]  ;;  %v943_v11 = vld [vmem:[#allocation10 + $0x20] sm:$0xff] }
  0x5b   :  { %1237 = vmatpush3.msra.mxu0 %v290_v17  ;;  %1238 = vmatprep.mubr.msk.f32.mxu0 %vm1508_vm0, %v1507_v0 }
  0x5c   :  { %1248 = vmatpush3.msra.mxu1 %v285_v18  ;;  %1249 = vmatprep.mubr.msk.f32.mxu1 %vm1508_vm0, %v1507_v0 }
  0x5d   :  { %1239 = vmatmul.mubr.msk.f32.vlgmr.msra.gmra.mxu0 %vm122_vm1, %v1600_v9  ;;  %1250 = vmatmul.mubr.msk.f32.vlgmr.msra.gmra.mxu1 %vm122_vm1, %v1602_v10 }
  0x5e   :  { %1252 = vmatprep.subr.mxu0 %v1507_v0  ;;  %1263 = vmatprep.subr.mxu1 %v1507_v0 }
  0x5f   :  { %1260 = vmatprep.mubr.msk.f32.mxu0 %vm1508_vm0, %v1507_v0  ;;  %1271 = vmatprep.mubr.msk.f32.mxu1 %vm1508_vm0, %v1507_v0 }
  0x60   :  { %1253 = vmatpush3.msra.mxu0 %v456_v19  ;;  %1264 = vmatpush3.msra.mxu1 %v452_v20 }
  0x61   :  { %1254 = vmatprep.subr.mxu0 %v1507_v0  ;;  %1265 = vmatprep.subr.mxu1 %v1507_v0 }
  0x62   :  { %1255 = vmatpush3.msra.mxu0 %v455_v21  ;;  %1266 = vmatpush3.msra.mxu1 %v451_v22 }
  0x63   :  { %1256 = vmatprep.subr.mxu0 %v1507_v0  ;;  %1267 = vmatprep.subr.mxu1 %v1507_v0 }
  0x64   :  { %1257 = vmatpush3.msra.mxu0 %v454_v23  ;;  %1268 = vmatpush3.msra.mxu1 %v450_v24 }
  0x65   :  { %1258 = vmatprep.subr.mxu0 %v1507_v0  ;;  %1269 = vmatprep.subr.mxu1 %v1507_v0 }
  0x66   :  { %1259 = vmatpush3.msra.mxu0 %v453_v25  ;;  %1270 = vmatpush3.msra.mxu1 %v449_v26 }
  0x67   :  { %1274 = vmatprep.subr.mxu0 %v1507_v0  ;;  %1285 = vmatprep.subr.mxu1 %v1507_v0 }
  0x68   :  { %1261 = vmatmul.mubr.msk.f32.vlgmr.msra.gmra.mxu0 %vm122_vm1, %v1600_v9  ;;  %1272 = vmatmul.mubr.msk.f32.vlgmr.msra.gmra.mxu1 %vm122_vm1, %v1602_v10 }
  0x69   :  { %1275 = vmatpush3.msra.mxu0 %v620_v27  ;;  %1286 = vmatpush3.msra.mxu1 %v615_v28  ;;  %v1140_v27 = vld [vmem:[%s1718_s4 + $0x1] ss:$0 sm:$0xff] }
  0x6a   :  { %1276 = vmatprep.subr.mxu0 %v1507_v0  ;;  %1287 = vmatprep.subr.mxu1 %v1507_v0 }
  0x6b   :  { %1277 = vmatpush3.msra.mxu0 %v619_v29  ;;  %1288 = vmatpush3.msra.mxu1 %v614_v30  ;;  %v1135_v30 = vld [vmem:[%s1718_s4] ss:$0 sm:$0xff] }
  0x6c   :  { %1278 = vmatprep.subr.mxu0 %v1507_v0  ;;  %1289 = vmatprep.subr.mxu1 %v1507_v0 }
  0x6d   :  { %1279 = vmatpush3.msra.mxu0 %v618_v31  ;;  %1290 = vmatpush3.msra.mxu1 %v613_v32 }
  0x6e   :  { %1280 = vmatprep.subr.mxu0 %v1507_v0  ;;  %1291 = vmatprep.subr.mxu1 %v1507_v0 }
  0x6f   :  { %1281 = vmatpush3.msra.mxu0 %v617_v33  ;;  %1282 = vmatprep.mubr.msk.f32.mxu0 %vm1508_vm0, %v1507_v0 }
  0x70   :  { %1292 = vmatpush3.msra.mxu1 %v612_v34  ;;  %1293 = vmatprep.mubr.msk.f32.mxu1 %vm1508_vm0, %v1507_v0 }
  0x71   :  { %1283 = vmatmul.mubr.msk.f32.vlgmr.msra.gmra.mxu0 %vm122_vm1, %v1600_v9  ;;  %1294 = vmatmul.mubr.msk.f32.vlgmr.msra.gmra.mxu1 %vm122_vm1, %v1602_v10 }
  0x72   :  { %1307 = vmatprep.subr.mxu1 %v1507_v0  ;;  %1296 = vmatprep.subr.mxu0 %v1507_v0 }
  0x73   :  { %1315 = vmatprep.mubr.msk.f32.mxu1 %vm1508_vm0, %v1507_v0  ;;  %1304 = vmatprep.mubr.msk.f32.mxu0 %vm1508_vm0, %v1507_v0 }
  0x74   :  { %1308 = vmatpush3.msra.mxu1 %v779_v35  ;;  %1297 = vmatpush3.msra.mxu0 %v785_v36  ;;  %v1144_v36 = vld [vmem:[%s1720_s6] ss:$0 sm:$0xff]  ;;  %s1509_s6 = smov 32  }
  0x75   :  { %1309 = vmatprep.subr.mxu1 %v1507_v0  ;;  %1298 = vmatprep.subr.mxu0 %v1507_v0 }
  0x76   :  { %1310 = vmatpush3.msra.mxu1 %v778_v37  ;;  %1299 = vmatpush3.msra.mxu0 %v784_v38 }
  0x77   :  { %1311 = vmatprep.subr.mxu1 %v1507_v0  ;;  %1300 = vmatprep.subr.mxu0 %v1507_v0 }
  0x78   :  { %1312 = vmatpush3.msra.mxu1 %v777_v39  ;;  %1301 = vmatpush3.msra.mxu0 %v783_v40 }
  0x79   :  { %1313 = vmatprep.subr.mxu1 %v1507_v0  ;;  %1302 = vmatprep.subr.mxu0 %v1507_v0 }
  0x7a   :  { %1314 = vmatpush3.msra.mxu1 %v776_v41  ;;  %1303 = vmatpush3.msra.mxu0 %v782_v42 }
  0x7b   :  { %1316 = vmatmul.mubr.msk.f32.vlgmr.msra.gmra.mxu1 %vm122_vm1, %v1602_v10  ;;  %1329 = vmatprep.subr.mxu1 %v1507_v0 }
  0x7c   :  { %1318 = vmatprep.subr.mxu0 %v1507_v0  ;;  %1330 = vmatpush3.msra.mxu1 %v940_v43 }
  0x7d   :  { %1331 = vmatprep.subr.mxu1 %v1507_v0  ;;  %1337 = vmatprep.mubr.msk.f32.mxu1 %vm1508_vm0, %v1507_v0 }
  0x7e   :  { %1332 = vmatpush3.msra.mxu1 %v939_v44  ;;  %v1147_v44 = vld [vmem:[%s1722_s8] ss:$0 sm:$0xff] }
  0x7f   :  { %1333 = vmatprep.subr.mxu1 %v1507_v0 }
  0x80   :  { %1334 = vmatpush3.msra.mxu1 %v938_v45 }
  0x81   :  { %1335 = vmatprep.subr.mxu1 %v1507_v0 }
  0x82   :  { %1336 = vmatpush3.msra.mxu1 %v937_v46 }
  0x83   :  { %1338 = vmatmul.mubr.msk.f32.vlgmr.msra.gmra.mxu1 %vm122_vm1, %v1600_v9 }
 0x113   :  { %v192_v47 = vpop.f32.mrf.mxu0  ;;  %v265_v48 = vpop.f32.mrf.mxu1 }
 0x114   :  { %v266_v50 = vadd.f32 %v265_v48, %v192_v47 }
 0x115   :  { %v1218_v51 = vpop.f32.mrf.mxu0  ;;  %v1229_v52 = vpop.f32.mrf.mxu1 }
 0x116   :  { %v277_v53 = vadd.f32 %v1126_v49, %v266_v50 }
 0x118   :  { %v1127_v54 = vmul.f32 -1.442695, %v277_v53 }
 0x11a   :  { %1351 = vpow2.f32 %v1127_v54 }
 0x11d   :  { %v360_v55 = vpop.f32.mrf.mxu0  ;;  %v430_v56 = vpop.f32.mrf.mxu1 }
 0x11e   :  { %v431_v58 = vadd.f32 %v430_v56, %v360_v55 }
 0x11f   :  { %v1240_v59 = vpop.f32.mrf.mxu0  ;;  %v1251_v60 = vpop.f32.mrf.mxu1 }
 0x120   :  { %v442_v61 = vadd.f32 %v1131_v57, %v431_v58 }
 0x122   :  { %v1132_v62 = vmul.f32 -1.442695, %v442_v61 }
 0x124   :  { %1353 = vpow2.f32 %v1132_v62 }
 0x127   :  { %v1352_v63 = vpop.eup %1351 }
 0x128   :  { %v281_v1 = vadd.f32 1.0, %v1352_v63  ;;  %v523_v14 = vpop.f32.mrf.mxu0  ;;  %v593_v15 = vpop.f32.mrf.mxu1 }
 0x129   :  { %v594_v16 = vadd.f32 %v593_v15, %v523_v14 }
 0x12a   :  { %1355 = vrcp.f32 %v281_v1  ;;  %v1262_v17 = vpop.f32.mrf.mxu0  ;;  %v1273_v18 = vpop.f32.mrf.mxu1 }
 0x12b   :  { %v604_v31 = vadd.f32 %v1135_v30, %v594_v16 }
 0x12d   :  { %v1136_v32 = vmul.f32 -1.442695, %v604_v31 }
 0x131   :  { %v1354_v2 = vpop.eup %1353  ;;  %v687_v19 = vpop.f32.mrf.mxu0 }
 0x132   :  { %v446_v3 = vadd.f32 1.0, %v1354_v2  ;;  %v757_v20 = vpop.f32.mrf.mxu1 }
 0x133   :  { %v758_v21 = vadd.f32 %v757_v20, %v687_v19  ;;  %v1284_v22 = vpop.f32.mrf.mxu0 }
 0x134   :  { %1357 = vrcp.f32 %v446_v3  ;;  %v1295_v23 = vpop.f32.mrf.mxu1 }
 0x135   :  { %v769_v28 = vadd.f32 %v1140_v27, %v758_v21 }
 0x137   :  { %v1356_v4 = vpop.eup %1355  ;;  %v1141_v29 = vmul.f32 -1.442695, %v769_v28 }
 0x138   :  { %v780_v5 = vmul.f32 %v1356_v4, %v1600_v9 }
 0x139   :  { %1359 = vpow2.f32 %v1141_v29 }
 0x13a   :  { %1305 = vmatmul.mubr.msk.f32.vlgmr.msra.gmra.mxu0 %vm122_vm1, %v780_v5  ;;  %1361 = vpow2.f32 %v1136_v32 }
 0x13b   :  { %1319 = vmatpush3.msra.mxu0 %v946_v6  ;;  %1326 = vmatprep.mubr.msk.f32.mxu0 %vm1508_vm0, %v1507_v0  ;;  %v925_v24 = vpop.f32.mrf.mxu1 }
 0x13c   :  { %1320 = vmatprep.subr.mxu0 %v1507_v0 }
 0x13d   :  { %1321 = vmatpush3.msra.mxu0 %v945_v7  ;;  %v1317_v25 = vpop.f32.mrf.mxu1 }
 0x13e   :  { %1322 = vmatprep.subr.mxu0 %v1507_v0 }
 0x13f   :  { %1323 = vmatpush3.msra.mxu0 %v944_v8 }
 0x140   :  { %1324 = vmatprep.subr.mxu0 %v1507_v0 }
 0x141   :  { %v1358_v12 = vpop.eup %1357  ;;  %1325 = vmatpush3.msra.mxu0 %v943_v11 }
 0x142   :  { %v941_v13 = vmul.f32 %v1358_v12, %v1602_v10 }
 0x143   :  { %v1086_v26 = vpop.f32.mrf.mxu1 }
 0x144   :  { %1327 = vmatmul.mubr.msk.f32.vlgmr.msra.gmra.mxu0 %vm122_vm1, %v941_v13 }
 0x145   :  { %v1339_v0 = vpop.f32.mrf.mxu1 }
 0x146   :  { %v1360_v33 = vpop.eup %1359 }
 0x147   :  { %v773_v34 = vadd.f32 1.0, %v1360_v33  ;;  %v1362_v38 = vpop.eup %1361 }
 0x148   :  { %v608_v41 = vadd.f32 1.0, %v1362_v38 }
 0x149   :  { %1363 = vrcp.f32 %v773_v34 }
 0x156   :  { %v1364_v42 = vpop.eup %1363 }
 0x157   :  { %v1105_v48 = vsub.f32 1.0, %v1364_v42 }
 0x159   :  { %v1106_v49 = vmul.f32 %v1105_v48, %v1600_v9 }
 0x1fa   :  { %v855_v35 = vpop.f32.mrf.mxu0 }
 0x1fb   :  { %v926_v37 = vadd.f32 %v925_v24, %v855_v35 }
 0x1fc   :  { %v1306_v39 = vpop.f32.mrf.mxu0 }
 0x1fd   :  { %v936_v40 = vadd.f32 %v1144_v36, %v926_v37 }
 0x1ff   :  { %1365 = vtanh.f32 %v936_v40 }
 0x200   :  { %1367 = vrcp.f32 %v608_v41 }
 0x204   :  { %v1016_v43 = vpop.f32.mrf.mxu0 }
 0x205   :  { %v1087_v45 = vadd.f32 %v1086_v26, %v1016_v43 }
 0x206   :  { %v1328_v46 = vpop.f32.mrf.mxu0 }
 0x207   :  { %v1097_v47 = vadd.f32 %v1147_v44, %v1087_v45 }
 0x209   :  { %1369 = vtanh.f32 %v1097_v47 }
 0x20c   :  { %v1366_v50 = vpop.eup %1365 }
 0x20d   :  { %v1104_v51 = vmul.f32 %v1366_v50, %v1364_v42  ;;  %v1368_v53 = vpop.eup %1367 }
 0x20e   :  { %v1101_v54 = vsub.f32 1.0, %v1368_v53 }
 0x20f   :  { %v1107_v52 = vadd.f32 %v1106_v49, %v1104_v51 }
 0x210   :  { %v1102_v57 = vmul.f32 %v1101_v54, %v1602_v10 }
 0x211   :  { %1109 = vrot.lane.b32.xlu0 %v1107_v52, %s1509_s6 }
 0x216   :  { %v1370_v55 = vpop.eup %1369 }
 0x217   :  { %v1100_v56 = vmul.f32 %v1370_v55, %v1368_v53 }
 0x219   :  { %v1103_v58 = vadd.f32 %v1102_v57, %v1100_v56 }
 0x283   :  { %v1110_v59 = vpop.permute.xlu0 %1109 }
 0x284   :  { %v1112_v60 = vsel %vm122_vm1, %v1103_v58, %v1110_v59 }
 0x285   :  { %1114 = vst.msk [vmem:[%s1723_s9] sm:$0x3] %vm1113_vm2, %v1112_v60 }
 0x286   :  { %1119 = vsyncpa [#allocation3], 1 }
 0x287   :  { %1120 = vsyncpa [#allocation5], 1 }
 0x288   :  { %1121 = vsyncpa [#allocation8], 1 }
 0x289   :  { %1122 = vsyncpa [#allocation11], 1 }

</bundles_post_ra>
